<compile_context>
chip_gen: v5e
topology: v5e:2x2
jax: 0.10.0
libtpu: 0.0.40
codegen_flags: <defaults>
</compile_context>

<pallas_src>
import math
from functools import partial

import jax
import jax.numpy as jnp
from jax.experimental import pallas as pl
from jax.experimental.pallas import tpu as pltpu


_HIGHEST = jax.lax.Precision.HIGHEST


# ---------------------------------------------------------------------------
# Kernel 1: row-tiled linear  y = x @ W + b
# ---------------------------------------------------------------------------
def _linear_kernel(x_ref, w_ref, b_ref, o_ref):
    # x_ref: (tm, C_in)   row tile of tokens
    # w_ref: (C_in, C_out) resident weight (constant index_map)
    # b_ref: (1, C_out)    resident bias
    acc = jnp.dot(
        x_ref[...],
        w_ref[...],
        preferred_element_type=jnp.float32,
        precision=_HIGHEST,
    )
    acc = acc + b_ref[...]
    o_ref[...] = acc.astype(o_ref.dtype)


def _pick_row_tile(m, cap=512):
    """Largest divisor of m that is <= cap and legal as a block dim."""
    cap = min(m, cap)
    for t in range(cap, 0, -1):
        if m % t == 0 and (t % 8 == 0 or t == m):
            return t
    return m  # fall back to a single full-size block (always legal)


def linear_pallas(x2d, w, b=None, *, tm_cap=512):
    """x2d: (M, C_in); w: (C_in, C_out); b: (C_out,) or None."""
    M, C_in = x2d.shape
    C_out = w.shape[1]
    tm = _pick_row_tile(M, tm_cap)

    b2d = (jnp.zeros((1, C_out), x2d.dtype) if b is None
           else b.reshape(1, C_out).astype(x2d.dtype))

    return pl.pallas_call(
        _linear_kernel,
        out_shape=jax.ShapeDtypeStruct((M, C_out), x2d.dtype),
        grid=(M // tm,),
        in_specs=[
            pl.BlockSpec((tm, C_in), lambda i: (i, 0)),      # x row tile
            pl.BlockSpec((C_in, C_out), lambda i: (0, 0)),   # W (resident)
            pl.BlockSpec((1, C_out), lambda i: (0, 0)),      # b (resident)
        ],
        out_specs=pl.BlockSpec((tm, C_out), lambda i: (i, 0)),
        compiler_params=pltpu.CompilerParams(
            dimension_semantics=("parallel",),
        ),
    )(x2d, w, b2d)


# ---------------------------------------------------------------------------
# Kernel 2: per-(batch, head) attention core
# ---------------------------------------------------------------------------
def _attn_core_kernel(q_ref, k_ref, v_ref, o_ref, *, scale):
    # refs: (1, 1, N, hd)
    q = q_ref[0, 0] * scale                    # (N, hd), matches q*scale in torch
    k = k_ref[0, 0]                            # (N, hd)
    v = v_ref[0, 0]                            # (N, hd)

    # S = q @ k^T  (contract head_dim), f32 accumulation on the MXU.
    s = jax.lax.dot_general(
        q, k, (((1,), (1,)), ((), ())),
        preferred_element_type=jnp.float32,
        precision=_HIGHEST,
    )                                          # (N, N)

    # Numerically-stable softmax over the key axis.
    s_max = jnp.max(s, axis=-1, keepdims=True)
    p = jnp.exp(s - s_max)
    p = p / jnp.sum(p, axis=-1, keepdims=True)

    # attn_drop(p=0.0) is identity.

    o = jnp.dot(
        p.astype(v.dtype), v,
        preferred_element_type=jnp.float32,
        precision=_HIGHEST,
    )                                          # (N, hd)
    o_ref[0, 0] = o.astype(o_ref.dtype)


def attention_core_pallas(q, k, v, *, scale):
    """q, k, v: (B, H, N, hd) -> (B, H, N, hd)."""
    B, H, N, hd = q.shape
    spec = pl.BlockSpec((1, 1, N, hd), lambda b, h: (b, h, 0, 0))
    return pl.pallas_call(
        partial(_attn_core_kernel, scale=scale),
        out_shape=jax.ShapeDtypeStruct((B, H, N, hd), q.dtype),
        grid=(B, H),
        in_specs=[spec, spec, spec],
        out_specs=spec,
        compiler_params=pltpu.CompilerParams(
            dimension_semantics=("parallel", "parallel"),
        ),
    )(q, k, v)


# ---------------------------------------------------------------------------
# Full module forward
# ---------------------------------------------------------------------------
def attention_supervised_video(x, w_qkv, w_proj, b_proj, *, num_heads,
                               q_bias=None, v_bias=None, qk_scale=None):
    """Forward pass of Attention_supervised__video.

    x:      (B, N, C) tokens
    w_qkv:  (C, 3*all_head_dim)   == PyTorch qkv.weight.T
    w_proj: (all_head_dim, C)     == PyTorch proj.weight.T
    b_proj: (C,)
    """
    B, N, C = x.shape
    all_head_dim = w_qkv.shape[1] // 3
    head_dim = all_head_dim // num_heads
    scale = qk_scale if qk_scale is not None else head_dim ** (-0.5)

    # qkv bias (only when qkv_bias=True in the torch module; default is None).
    qkv_b = None
    if q_bias is not None:
        qkv_b = jnp.concatenate([q_bias, jnp.zeros_like(v_bias), v_bias])

    # --- qkv projection: (B*N, C) @ (C, 3*all_head_dim) -------------------
    x2d = x.reshape(B * N, C)
    qkv = linear_pallas(x2d, w_qkv, qkv_b)                   # (B*N, 3*Chd)

    # Split into per-head q, k, v (host-side layout plumbing, XLA handles it).
    qkv = qkv.reshape(B, N, 3, num_heads, head_dim)
    qkv = jnp.transpose(qkv, (2, 0, 3, 1, 4))                # (3, B, H, N, hd)
    q, k, v = qkv[0], qkv[1], qkv[2]

    # --- attention core per (batch, head) ---------------------------------
    o = attention_core_pallas(q, k, v, scale=scale)          # (B, H, N, hd)

    # --- output projection -------------------------------------------------
    o = jnp.transpose(o, (0, 2, 1, 3)).reshape(B * N, all_head_dim)
    out = linear_pallas(o, w_proj, b_proj)                   # (B*N, C) lane-dense
    # proj_drop(p=0.0) is identity.
    return out.reshape(B, N, C)


# ---------------------------------------------------------------------------
# Pure-JAX reference (mirrors the PyTorch forward)
# ---------------------------------------------------------------------------
def _reference_attention(x, w_qkv, w_proj, b_proj, *, num_heads, qk_scale=None):
    B, N, C = x.shape
    all_head_dim = w_qkv.shape[1] // 3
    head_dim = all_head_dim // num_heads
    scale = qk_scale if qk_scale is not None else head_dim ** (-0.5)

    qkv = jnp.einsum("bnc,cd->bnd", x, w_qkv, precision=_HIGHEST)
    qkv = qkv.reshape(B, N, 3, num_heads, head_dim).transpose(2, 0, 3, 1, 4)
    q, k, v = qkv[0], qkv[1], qkv[2]
    q = q * scale
    attn = jnp.einsum("bhnd,bhmd->bhnm", q, k, precision=_HIGHEST)
    attn = jax.nn.softmax(attn, axis=-1)
    o = jnp.einsum("bhnm,bhmd->bhnd", attn, v, precision=_HIGHEST)
    o = o.transpose(0, 2, 1, 3).reshape(B, N, all_head_dim)
    return jnp.einsum("bnd,dc->bnc", o, w_proj, precision=_HIGHEST) + b_proj


if __name__ == "__main__":
    # Small test config consistent with the module: dim=128, num_heads=8
    # (module default) -> head_dim=16, all_head_dim=128.  dim is a multiple of
    # 128 so all projection outputs are lane-dense.
    B, N = 2, 16
    dim = 128
    num_heads = 8
    head_dim = dim // num_heads
    all_head_dim = head_dim * num_heads

    key = jax.random.PRNGKey(0)
    kx, kqkv, kpw, kpb = jax.random.split(key, 4)

    x = jax.random.normal(kx, (B, N, dim), dtype=jnp.float32)

    # Parameters stored pre-transposed vs. PyTorch: (in, out) == weight.T.
    lim_qkv = 1.0 / math.sqrt(dim)
    lim_proj = 1.0 / math.sqrt(all_head_dim)
    w_qkv = jax.random.uniform(kqkv, (dim, 3 * all_head_dim), jnp.float32,
                               -lim_qkv, lim_qkv)
    w_proj = jax.random.uniform(kpw, (all_head_dim, dim), jnp.float32,
                                -lim_proj, lim_proj)
    b_proj = jax.random.uniform(kpb, (dim,), jnp.float32, -lim_proj, lim_proj)

    out = attention_supervised_video(x, w_qkv, w_proj, b_proj,
                                     num_heads=num_heads)
    out = jax.block_until_ready(out)

    ref = _reference_attention(x, w_qkv, w_proj, b_proj, num_heads=num_heads)
    assert out.shape == (B, N, dim)
    max_err = float(jnp.max(jnp.abs(out - ref)))
    assert jnp.allclose(out, ref, atol=2e-3, rtol=2e-3), \
        f"mismatch vs reference (max abs err {max_err})"

    print("KERNEL_OK")
</pallas_src>

<mosaic_0001>
module attributes {stable_mosaic.version = 11 : i64} {
  func.func @_linear_kernel(%arg0: i32, %arg1: memref<32x128xf32, #tpu.memory_space<vmem>>, %arg2: memref<128x384xf32, #tpu.memory_space<vmem>>, %arg3: memref<1x384xf32, #tpu.memory_space<vmem>>, %arg4: memref<32x384xf32, #tpu.memory_space<vmem>>) attributes {dimension_semantics = [#tpu.dimension_semantics<parallel>], iteration_bounds = array<i64: 1>, scalar_prefetch = 0 : i64, scratch_operands = 0 : i64, tpu.core_type = #tpu.core_type<tc>, window_params = [{transform_indices = @transform_0, window_bounds = array<i64: 32, 128>}, {pipeline_mode = #tpu.pipeline_mode<synchronous>, transform_indices = @transform_1, window_bounds = array<i64: 128, 384>}, {pipeline_mode = #tpu.pipeline_mode<synchronous>, transform_indices = @transform_2, window_bounds = array<i64: 1, 384>}, {transform_indices = @transform_3, window_bounds = array<i64: 32, 384>}]} {
    %c0 = arith.constant 0 : index
    %c0_0 = arith.constant 0 : index
    %0 = vector.load %arg1[%c0, %c0_0] : memref<32x128xf32, #tpu.memory_space<vmem>>, vector<32x128xf32>
    %c0_1 = arith.constant 0 : index
    %c0_2 = arith.constant 0 : index
    %1 = vector.load %arg2[%c0_1, %c0_2] : memref<128x384xf32, #tpu.memory_space<vmem>>, vector<128x384xf32>
    %cst = arith.constant dense<0.000000e+00> : vector<32x384xf32>
    %2 = tpu.matmul %0, %1, %cst {dimension_numbers = #tpu.dot_dimension_numbers<[1], [0], [0], [1], [0, 0, 1, 1], [], []>, precision = #tpu.contract_precision<fp32>} : vector<32x128xf32>, vector<128x384xf32>, vector<32x384xf32> -> vector<32x384xf32>
    %c0_3 = arith.constant 0 : index
    %c0_4 = arith.constant 0 : index
    %3 = vector.load %arg3[%c0_3, %c0_4] : memref<1x384xf32, #tpu.memory_space<vmem>>, vector<1x384xf32>
    %4 = vector.broadcast %3 : vector<1x384xf32> to vector<32x384xf32>
    %5 = arith.addf %2, %4 : vector<32x384xf32>
    %c0_5 = arith.constant 0 : index
    %c0_6 = arith.constant 0 : index
    %6 = vector.load %arg4[%c0_5, %c0_6] : memref<32x384xf32, #tpu.memory_space<vmem>>, vector<32x384xf32>
    tpu.vector_store %arg4[%c0_5, %c0_6], %5 {strides = array<i32>} : memref<32x384xf32, #tpu.memory_space<vmem>>, vector<32x384xf32>,
    return
  }
  func.func @transform_0(%arg0: i32) -> (i32, i32) {
    %c0_i32 = arith.constant 0 : i32
    %c0_i32_0 = arith.constant 0 : i32
    return %arg0, %c0_i32 : i32, i32
  }
  func.func @transform_1(%arg0: i32) -> (i32, i32) {
    %c0_i32 = arith.constant 0 : i32
    %c0_i32_0 = arith.constant 0 : i32
    %c0_i32_1 = arith.constant 0 : i32
    return %c0_i32, %c0_i32_0 : i32, i32
  }
  func.func @transform_2(%arg0: i32) -> (i32, i32) {
    %c0_i32 = arith.constant 0 : i32
    %c0_i32_0 = arith.constant 0 : i32
    %c0_i32_1 = arith.constant 0 : i32
    return %c0_i32, %c0_i32_0 : i32, i32
  }
  func.func @transform_3(%arg0: i32) -> (i32, i32) {
    %c0_i32 = arith.constant 0 : i32
    %c0_i32_0 = arith.constant 0 : i32
    return %arg0, %c0_i32 : i32, i32
  }
}

</mosaic_0001>

<bundles_post_ra>
// kernel: tpu_custom_call.1
= control target key start
LH: loop header
LB: loop body
LE: loop exit
PB: predicated region body
PF: predicated region fallthrough
CT: control target
= control target key end

     0   :  { %8 = vsyncpa [#allocation3], 0  ;;  %s2460_s0 = inlined_call_operand.hbm [shape: f32[32,128], index: 0, kind: input, shape index: {}]   ;;  %s2461_s1 = inlined_call_operand.hbm [shape: f32[128,384], index: 1, kind: input, shape index: {}]   ;;  %s2462_s2 = inlined_call_operand.hbm [shape: f32[1,384], index: 2, kind: input, shape index: {}]   ;;  %s2463_s3 = inlined_call_operand.hbm [shape: f32[32,384], index: 3, kind: output, shape index: {}]  }
   0x1   :  { %9 = vsyncpa [#allocation6], 0  ;;  %s28_s14 = sshll.u32 %s2461_s1, 4  ;;  %s29_s14 = int_to_ptr.hbm [resolvable:$true] %s28_s14 }
   0x2   :  { %10 = vsyncpa [#allocation4], 0  ;;  %s1596_s15 = smov [#allocation5]   ;;  %s15_s19 = sshll.u32 %s2460_s0, 4  ;;  %s16_s19 = int_to_ptr.hbm [resolvable:$true] %s15_s19 }
   0x3   :  { %s30_s16 = sshll.u32 %s1596_s15, 4  ;;  %s1597_s20 = smov 384   ;;  %s31_s16 = int_to_ptr.vmem [resolvable:$true] %s30_s16 }
   0x4   :  { %s1598_s21 = smov 24   ;;  %s1599_s22 = smov [#allocation2]  }
   0x5   :  { %36 = dma.hbm_to_vmem [thread:$0]  %s29_s14, 6144, %s31_s16, [#allocation6], %s1597_s20, %s1597_s20, %s1598_s21  }
   0x6   :  { %s17_s23 = sshll.u32 %s1599_s22, 4  ;;  %s1600_s1 = smov 128   ;;  %s18_s23 = int_to_ptr.vmem [resolvable:$true] %s17_s23 }
   0x7   :  { %s1601_s24 = smov 8   ;;  %s42_s27 = sshll.u32 %s2462_s2, 4  ;;  %s43_s27 = int_to_ptr.hbm [resolvable:$true] %s42_s27 }
   0x8   :  { %23 = dma.hbm_to_vmem [thread:$0]  %s16_s19, 512, %s18_s23, [#allocation3], %s1600_s1, %s1600_s1, %s1601_s24  }
   0x9   :  { %s1602_s28 = smov [#allocation7]  }
   0xa   :  { %s44_s0 = sshll.u32 %s1602_s28, 4  ;;  %s45_s0 = int_to_ptr.vmem [resolvable:$true] %s44_s0 }
   0xb   :  { %47 = dma.hbm_to_vmem [thread:$0]  %s43_s27, 48, %s45_s0, [#allocation6]  }
   0xc   :  { %1590 = dma.done.wait [#allocation3], 512  }
   0xd   :  { %1591 = vsyncadd [#allocation3], 4294966784 }
   0xe   :  { %1592 = dma.done.wait [#allocation6], 6192  }
   0xf   :  { %1593 = vsyncadd [#allocation6], 4294961104  ;;  %v109_v0 = vld [vmem:[#allocation5 + $0x168] sm:$0xff]  ;;  %v106_v1 = vld [vmem:[#allocation5 + $0x150] sm:$0xff]  ;;  %s1603_s2 = smov [#allocation8]   ;;  %s1440_s5 = sshll.u32 %s2463_s3, 4  ;;  %s1441_s5 = int_to_ptr.hbm [resolvable:$true] %s1440_s5 }
  0x10   :  { %v103_v2 = vld [vmem:[#allocation5 + $0x138] sm:$0xff]  ;;  %v1636_v3 = vand.u32 4294901760, %v109_v0  ;;  %v1638_v4 = vand.u32 4294901760, %v106_v1  ;;  %v100_v6 = vld [vmem:[#allocation5 + $0x120] sm:$0xff]  ;;  %v97_v7 = vld [vmem:[#allocation5 + $0x108] sm:$0xff]  ;;  %s1438_s29 = sshll.u32 %s1603_s2, 4  ;;  %s1439_s29 = int_to_ptr.vmem [resolvable:$true] %s1438_s29 }
  0x11   :  { %v1640_v5 = vand.u32 4294901760, %v103_v2  ;;  %v94_v8 = vld [vmem:[#allocation5 + $0xf0] sm:$0xff]  ;;  %v1642_v9 = vand.u32 4294901760, %v100_v6  ;;  %v1644_v10 = vand.u32 4294901760, %v97_v7  ;;  %v91_v12 = vld [vmem:[#allocation5 + $0xd8] sm:$0xff]  ;;  %v88_v13 = vld [vmem:[#allocation5 + $0xc0] sm:$0xff] }
  0x12   :  { %v1646_v11 = vand.u32 4294901760, %v94_v8  ;;  %121 = vmatpush.msra.mxu0 %v1636_v3  ;;  %v1650_v14 = vsub.f32 %v109_v0, %v1636_v3  ;;  %v1653_v15 = vsub.f32 %v106_v1, %v1638_v4  ;;  %368 = vmatpush.msra.mxu3 %v1636_v3  ;;  %v1659_v17 = vand.u32 4294901760, %v91_v12  ;;  %v85_v18 = vld [vmem:[#allocation5 + $0xa8] sm:$0xff]  ;;  %v82_v26 = vld [vmem:[#allocation5 + $0x90] sm:$0xff]  ;;  %v79_v36 = vld [vmem:[#allocation5 + $0x78] sm:$0xff] }
  0x13   :  { %v1657_v16 = vsub.f32 %v103_v2, %v1640_v5  ;;  %v1662_v19 = vsub.f32 %v100_v6, %v1642_v9  ;;  %v1665_v20 = vsub.f32 %v97_v7, %v1644_v10  ;;  %v1675_v25 = vand.u32 4294901760, %v88_v13  ;;  %v76_v43 = vld [vmem:[#allocation5 + $0x60] sm:$0xff]  ;;  %v73_v49 = vld [vmem:[#allocation5 + $0x48] sm:$0xff]  ;;  %v70_v55 = vld [vmem:[#allocation5 + $0x30] sm:$0xff] }
  0x14   :  { %v1668_v21 = vsub.f32 %v94_v8, %v1646_v11  ;;  %123 = vmatpush.msra.mxu0 %v1638_v4  ;;  %300 = vmatpush.msra.mxu2 %v1650_v14  ;;  %v2478_v22 = vand.u32 4294901760, %v1650_v14  ;;  %v2476_v23 = vand.u32 4294901760, %v1653_v15  ;;  %v1680_v28 = vsub.f32 %v91_v12, %v1659_v17  ;;  %v60_v56 = vld [vmem:[#allocation2] sm:$0xff]  ;;  %v67_v62 = vld [vmem:[#allocation5 + $0x18] sm:$0xff]  ;;  %v110_v6 = vld [vmem:[#allocation5 + $0x170] sm:$0xff] }
  0x15   :  { %v2475_v24 = vand.u32 4294901760, %v1657_v16  ;;  %370 = vmatpush.msra.mxu3 %v1638_v4  ;;  %v2473_v27 = vand.u32 4294901760, %v1662_v19  ;;  %v1682_v29 = vand.u32 4294901760, %v85_v18  ;;  %v2472_v33 = vand.u32 4294901760, %v1665_v20  ;;  %v64_v12 = vld [vmem:[#allocation5] sm:$0xff] }
  0x16   :  { %125 = vmatpush.msra.mxu0 %v1640_v5  ;;  %303 = vmatpush.msra.mxu2 %v1653_v15  ;;  %v188_v30 = vsub.f32 %v1650_v14, %v2478_v22  ;;  %v194_v31 = vsub.f32 %v1653_v15, %v2476_v23  ;;  %v1697_v34 = vand.u32 4294901760, %v82_v26  ;;  %v2471_v35 = vand.u32 4294901760, %v1668_v21 }
  0x17   :  { %v200_v32 = vsub.f32 %v1657_v16, %v2475_v24  ;;  %372 = vmatpush.msra.mxu3 %v1640_v5  ;;  %v206_v39 = vsub.f32 %v1662_v19, %v2473_v27  ;;  %v1706_v40 = vsub.f32 %v88_v13, %v1675_v25  ;;  %v1710_v41 = vsub.f32 %v85_v18, %v1682_v29 }
  0x18   :  { %127 = vmatpush.msra.mxu0 %v1642_v9  ;;  %306 = vmatpush.msra.mxu2 %v1657_v16  ;;  %v189_v37 = vand.u32 4294901760, %v188_v30  ;;  %v195_v38 = vand.u32 4294901760, %v194_v31  ;;  %v2469_v42 = vand.u32 4294901760, %v1680_v28  ;;  %v212_v45 = vsub.f32 %v1665_v20, %v2472_v33  ;;  %v107_v31 = vld [vmem:[#allocation5 + $0x158] sm:$0xff] }
  0x19   :  { %374 = vmatpush.msra.mxu3 %v1642_v9  ;;  %v201_v44 = vand.u32 4294901760, %v200_v32  ;;  %v1717_v46 = vand.u32 4294901760, %v79_v36  ;;  %v218_v47 = vsub.f32 %v1668_v21, %v2471_v35  ;;  %v1725_v48 = vsub.f32 %v82_v26, %v1697_v34  ;;  %v95_v33 = vld [vmem:[#allocation5 + $0xf8] sm:$0xff] }
  0x1a   :  { %129 = vmatpush.msra.mxu0 %v1644_v10  ;;  %190 = vmatpush.msra.mxu1 %v189_v37  ;;  %v207_v50 = vand.u32 4294901760, %v206_v39  ;;  %v1728_v51 = vand.u32 4294901760, %v76_v43  ;;  %v2468_v52 = vand.u32 4294901760, %v1706_v40  ;;  %v224_v53 = vsub.f32 %v1680_v28, %v2469_v42 }
  0x1b   :  { %309 = vmatpush.msra.mxu2 %v1662_v19  ;;  %376 = vmatpush.msra.mxu3 %v1644_v10  ;;  %v2467_v54 = vand.u32 4294901760, %v1710_v41  ;;  %v213_v57 = vand.u32 4294901760, %v212_v45  ;;  %v1739_v58 = vsub.f32 %v79_v36, %v1717_v46  ;;  %v1741_v59 = vand.u32 4294901760, %v73_v49 }
  0x1c   :  { %131 = vmatpush.msra.mxu0 %v1646_v11  ;;  %196 = vmatpush.msra.mxu1 %v195_v38  ;;  %v219_v60 = vand.u32 4294901760, %v218_v47  ;;  %v2465_v61 = vand.u32 4294901760, %v1725_v48  ;;  %v230_v63 = vsub.f32 %v1706_v40, %v2468_v52  ;;  %v1751_v0 = vsub.f32 %v76_v43, %v1728_v51  ;;  %v98_v52 = vld [vmem:[#allocation5 + $0x110] sm:$0xff] }
  0x1d   :  { %312 = vmatpush.msra.mxu2 %v1665_v20  ;;  %378 = vmatpush.msra.mxu3 %v1646_v11  ;;  %v1753_v1 = vand.u32 4294901760, %v70_v55  ;;  %v1755_v2 = vand.u32 4294901760, %v60_v56  ;;  %v225_v7 = vand.u32 4294901760, %v224_v53  ;;  %v236_v8 = vsub.f32 %v1710_v41, %v2467_v54 }
  0x1e   :  { %133 = vmatpush.msra.mxu0 %v1659_v17  ;;  %202 = vmatpush.msra.mxu1 %v201_v44  ;;  %v1764_v13 = vsub.f32 %v73_v49, %v1741_v59  ;;  %v1766_v18 = vand.u32 4294901760, %v67_v62  ;;  %v2464_v26 = vand.u32 4294901760, %v1739_v58  ;;  %v242_v32 = vsub.f32 %v1725_v48, %v2465_v61  ;;  %v61_v44 = vld [vmem:[#allocation2 + $0x8] sm:$0xff]  ;;  %v104_v49 = vld [vmem:[#allocation5 + $0x140] sm:$0xff] }
  0x1f   :  { %315 = vmatpush.msra.mxu2 %v1668_v21  ;;  %380 = vmatpush.msra.mxu3 %v1659_v17  ;;  %2502 = vst [vmem:[#allocation12_spill] sm:$0xff] %v1753_v1  ;;  %v1770_v30 = vsub.f32 %v60_v56, %v1755_v2  ;;  %v1777_v36 = vand.u32 4294901760, %v110_v6  ;;  %v231_v37 = vand.u32 4294901760, %v230_v63  ;;  %v1781_v38 = vsub.f32 %v70_v55, %v1753_v1 }
  0x20   :  { %135 = vmatpush.msra.mxu0 %v1675_v25  ;;  %208 = vmatpush.msra.mxu1 %v207_v50  ;;  %2503 = vst [vmem:[#allocation13_spill] sm:$0xff] %v1766_v18  ;;  %v1783_v39 = vand.u32 4294901760, %v64_v12  ;;  %v2466_v43 = vand.u32 4294901760, %v1751_v0  ;;  %v1791_v47 = vand.u32 4294901760, %v107_v31  ;;  %v237_v50 = vand.u32 4294901760, %v236_v8 }
  0x21   :  { %318 = vmatpush.msra.mxu2 %v1680_v28  ;;  %382 = vmatpush.msra.mxu3 %v1675_v25  ;;  %2504 = vst [vmem:[#allocation14_spill] sm:$0xff] %v1770_v30  ;;  %v1789_v45 = vand.u32 4294901760, %v1770_v30  ;;  %v248_v53 = vsub.f32 %v1739_v58, %v2464_v26  ;;  %v1798_v55 = vsub.f32 %v67_v62, %v1766_v18  ;;  %v2470_v56 = vand.u32 4294901760, %v1764_v13 }
  0x22   :  { %137 = vmatpush.msra.mxu0 %v1682_v29  ;;  %214 = vmatpush.msra.mxu1 %v213_v57  ;;  %2505 = vst [vmem:[#allocation15_spill] sm:$0xff] %v1783_v39  ;;  %v243_v57 = vand.u32 4294901760, %v242_v32  ;;  %v1806_v63 = vand.u32 4294901760, %v61_v44  ;;  %v254_v62 = vsub.f32 %v1751_v0, %v2466_v43  ;;  %v1813_v8 = vsub.f32 %v64_v12, %v1783_v39 }
  0x23   :  { %321 = vmatpush.msra.mxu2 %v1706_v40  ;;  %384 = vmatpush.msra.mxu3 %v1682_v29  ;;  %2506 = vst [vmem:[#allocation16_spill] sm:$0xff] %v1789_v45  ;;  %v2474_v26 = vand.u32 4294901760, %v1781_v38  ;;  %v1816_v61 = vand.u32 4294901760, %v104_v49  ;;  %v1823_v32 = vsub.f32 %v107_v31, %v1791_v47  ;;  %v260_v12 = vsub.f32 %v1764_v13, %v2470_v56 }
  0x24   :  { %139 = vmatpush.msra.mxu0 %v1697_v34  ;;  %220 = vmatpush.msra.mxu1 %v219_v60  ;;  %v1804_v60 = vsub.f32 %v110_v6, %v1777_v36  ;;  %v155_v6 = vsub.f32 %v1770_v30, %v1789_v45  ;;  %v2477_v43 = vand.u32 4294901760, %v1798_v55  ;;  %v1836_v42 = vsub.f32 %v61_v44, %v1806_v63 }
  0x25   :  { %324 = vmatpush.msra.mxu2 %v1710_v41  ;;  %386 = vmatpush.msra.mxu3 %v1697_v34  ;;  %v2482_v56 = vand.u32 4294901760, %v1813_v8  ;;  %v1844_v35 = vsub.f32 %v104_v49, %v1816_v61 }
  0x26   :  { %141 = vmatpush.msra.mxu0 %v1717_v46  ;;  %226 = vmatpush.msra.mxu1 %v225_v7  ;;  %2507 = vst [vmem:[#allocation17_spill] sm:$0xff] %v1804_v60  ;;  %v101_v7 = vld [vmem:[#allocation5 + $0x128] sm:$0xff]  ;;  %v2479_v31 = vand.u32 4294901760, %v1804_v60  ;;  %v1848_v44 = vand.u32 4294901760, %v155_v6  ;;  %v272_v49 = vsub.f32 %v1798_v55, %v2477_v43  ;;  %v1866_v23 = vand.u32 4294901760, %v1836_v42 }
  0x27   :  { %327 = vmatpush.msra.mxu2 %v1725_v48  ;;  %388 = vmatpush.msra.mxu3 %v1717_v46  ;;  %v1830_v54 = vand.u32 4294901760, %v101_v7  ;;  %2508 = vst [vmem:[#allocation18_spill] sm:$0xff] %v1836_v42 }
  0x28   :  { %143 = vmatpush.msra.mxu0 %v1728_v51  ;;  %232 = vmatpush.msra.mxu1 %v231_v37  ;;  %v249_v37 = vand.u32 4294901760, %v248_v53  ;;  %v266_v53 = vsub.f32 %v1781_v38, %v2474_v26  ;;  %2509 = vst [vmem:[#allocation19_spill] sm:$0xff] %v1844_v35  ;;  %v261_v26 = vand.u32 4294901760, %v260_v12  ;;  %v622_v6 = vsub.f32 %v1804_v60, %v2479_v31  ;;  %v92_v12 = vld [vmem:[#allocation5 + $0xe0] sm:$0xff] }
  0x29   :  { %330 = vmatpush.msra.mxu2 %v1739_v58  ;;  %390 = vmatpush.msra.mxu3 %v1728_v51  ;;  %2510 = vst [vmem:[#allocation20_spill] sm:$0xff] %v1848_v44  ;;  %v1858_v24 = vsub.f32 %v101_v7, %v1830_v54  ;;  %v278_v7 = vsub.f32 %v1813_v8, %v2482_v56  ;;  %v2512_v31 = vand.u32 4294901760, %v1823_v32  ;;  %v273_v56 = vand.u32 4294901760, %v272_v49 }
  0x2a   :  { %145 = vmatpush.msra.mxu0 %v1741_v59  ;;  %238 = vmatpush.msra.mxu1 %v237_v50  ;;  %v255_v50 = vand.u32 4294901760, %v254_v62  ;;  %v62_v62 = vld [vmem:[#allocation2 + $0x10] sm:$0xff]  ;;  %2511 = vst [vmem:[#allocation21_spill] sm:$0xff] %v1866_v23  ;;  %v267_v43 = vand.u32 4294901760, %v266_v53  ;;  %v2513_v53 = vand.u32 4294901760, %v1650_v14  ;;  %v1888_v60 = vand.u32 4294901760, %v92_v12 }
  0x2b   :  { %333 = vmatpush.msra.mxu2 %v1751_v0  ;;  %392 = vmatpush.msra.mxu3 %v1741_v59  ;;  %v1875_v27 = vand.u32 4294901760, %v62_v62  ;;  %v279_v14 = vand.u32 4294901760, %v278_v7 }
  0x2c   :  { %147 = vmatpush.msra.mxu0 %v1753_v1  ;;  %244 = vmatpush.msra.mxu1 %v243_v57  ;;  %v1851_v57 = vand.u32 4294901760, %v98_v52 }
  0x2d   :  { %336 = vmatpush.msra.mxu2 %v1764_v13  ;;  %394 = vmatpush.msra.mxu3 %v1753_v1 }
  0x2e   :  { %149 = vmatpush.msra.mxu0 %v1766_v18  ;;  %250 = vmatpush.msra.mxu1 %v249_v37  ;;  %v1868_v37 = vand.u32 4294901760, %v95_v33  ;;  %v1883_v1 = vsub.f32 %v98_v52, %v1851_v57 }
  0x2f   :  { %339 = vmatpush.msra.mxu2 %v1781_v38  ;;  %396 = vmatpush.msra.mxu3 %v1766_v18  ;;  %v628_v18 = vsub.f32 %v1823_v32, %v2512_v31  ;;  %v163_v31 = vsub.f32 %v1836_v42, %v1866_v23 }
  0x30   :  { %151 = vmatpush.msra.mxu0 %v1783_v39  ;;  %256 = vmatpush.msra.mxu1 %v255_v50  ;;  %v89_v50 = vld [vmem:[#allocation5 + $0xc8] sm:$0xff]  ;;  %v1895_v52 = vsub.f32 %v95_v33, %v1868_v37 }
  0x31   :  { %342 = vmatpush.msra.mxu2 %v1798_v55  ;;  %157 = vmatmul.f32.vlgmr.msra.gmra.mxu0 %v1848_v44  ;;  %v623_v44 = vand.u32 4294901760, %v622_v6  ;;  %v1904_v22 = vand.u32 4294901760, %v89_v50  ;;  %v86_v6 = vld [vmem:[#allocation5 + $0xb0] sm:$0xff]  ;;  %v629_v33 = vand.u32 4294901760, %v628_v18 }
  0x32   :  { %262 = vmatpush.msra.mxu1 %v261_v26  ;;  %427 = vmatpush.msrb.mxu0 %v2513_v53  ;;  %2514 = vst [vmem:[#allocation22_spill] sm:$0xff] %v1895_v52  ;;  %v2515_v26 = vand.u32 4294901760, %v1844_v35  ;;  %v1902_v53 = vsub.f32 %v62_v62, %v1875_v27  ;;  %v1915_v62 = vsub.f32 %v92_v12, %v1888_v60  ;;  %v1921_v18 = vand.u32 4294901760, %v86_v6 }
  0x33   :  { %345 = vmatpush.msra.mxu2 %v1813_v8  ;;  %398 = vmatpush.msra.mxu3 %v1783_v39  ;;  %v2516_v39 = vand.u32 4294901760, %v1653_v15  ;;  %v1929_v12 = vsub.f32 %v89_v50, %v1904_v22 }
  0x34   :  { %348 = vmatmul.f32.vlgmr.msra.gmra.mxu2 %v1770_v30  ;;  %268 = vmatpush.msra.mxu1 %v267_v43  ;;  %v634_v49 = vsub.f32 %v1844_v35, %v2515_v26  ;;  %v2517_v43 = vand.u32 4294901760, %v1858_v24  ;;  %v83_v26 = vld [vmem:[#allocation5 + $0x98] sm:$0xff]  ;;  %v1918_v35 = vand.u32 4294901760, %v163_v31 }
  0x35   :  { %555 = vmatpush.msrb.mxu2 %v1777_v36  ;;  %431 = vmatpush.msrb.mxu0 %v2516_v39  ;;  %v63_v39 = vld [vmem:[#allocation2 + $0x18] sm:$0xff]  ;;  %v1935_v15 = vand.u32 4294901760, %v83_v26 }
  0x36   :  { %402 = vmatmul.f32.vlgmr.msra.gmra.mxu3 %v1789_v45  ;;  %274 = vmatpush.msra.mxu1 %v273_v56  ;;  %v640_v7 = vsub.f32 %v1858_v24, %v2517_v43  ;;  %2518 = vst [vmem:[#allocation23_spill] sm:$0xff] %v1918_v35  ;;  %v2519_v56 = vand.u32 4294901760, %v1657_v16  ;;  %v635_v30 = vand.u32 4294901760, %v634_v49  ;;  %v1926_v43 = vand.u32 4294901760, %v1902_v53  ;;  %v80_v45 = vld [vmem:[#allocation5 + $0x80] sm:$0xff] }
  0x37   :  { %557 = vmatpush.msrb.mxu2 %v1791_v47  ;;  %624 = vmatpush.msrb.mxu3 %v623_v44  ;;  %v2520_v44 = vand.u32 4294901760, %v1883_v1  ;;  %v2521_v16 = vand.u32 4294901760, %v1662_v19  ;;  %v1941_v50 = vand.u32 4294901760, %v63_v39  ;;  %v77_v19 = vld [vmem:[#allocation5 + $0x68] sm:$0xff] }
  0x38   :  { %435 = vmatpush.msrb.mxu0 %v2519_v56  ;;  %280 = vmatpush.msra.mxu1 %v279_v14  ;;  %v641_v14 = vand.u32 4294901760, %v640_v7  ;;  %v171_v7 = vsub.f32 %v1902_v53, %v1926_v43  ;;  %v1970_v49 = vand.u32 4294901760, %v77_v19 }
  0x39   :  { %559 = vmatpush.msrb.mxu2 %v1816_v61  ;;  %630 = vmatpush.msrb.mxu3 %v629_v33  ;;  %v646_v31 = vsub.f32 %v1883_v1, %v2520_v44  ;;  %v2522_v33 = vand.u32 4294901760, %v1895_v52  ;;  %v1949_v44 = vsub.f32 %v86_v6, %v1921_v18  ;;  %v1961_v6 = vsub.f32 %v83_v26, %v1935_v15 }
  0x3a   :  { %439 = vmatpush.msrb.mxu0 %v2521_v16  ;;  %282 = vmatmul.f32.vlgmr.msra.gmra.mxu1 %v1755_v2  ;;  %v2523_v16 = vand.u32 4294901760, %v1665_v20  ;;  %v2524_v20 = vand.u32 4294901760, %v1915_v62 }
  0x3b   :  { %165 = vmatmul.f32.gmra.mxu0 %v1918_v35  ;;  %561 = vmatpush.msrb.mxu2 %v1830_v54  ;;  %v652_v56 = vsub.f32 %v1895_v52, %v2522_v33  ;;  %v1956_v35 = vand.u32 4294901760, %v80_v45  ;;  %v647_v33 = vand.u32 4294901760, %v646_v31  ;;  %v74_v52 = vld [vmem:[#allocation5 + $0x50] sm:$0xff] }
  0x3c   :  { %636 = vmatpush.msrb.mxu3 %v635_v30  ;;  %443 = vmatpush.msrb.mxu0 %v2523_v16  ;;  %v658_v30 = vsub.f32 %v1915_v62, %v2524_v20  ;;  %v1968_v16 = vsub.f32 %v63_v39, %v1941_v50  ;;  %v2526_v39 = vand.u32 4294901760, %v1929_v12 }
  0x3d   :  { %506 = vmatpush.msrb.mxu1 %v1636_v3  ;;  %353 = vmatmul.f32.gmra.mxu2 %v1836_v42  ;;  %v2525_v3 = vand.u32 4294901760, %v1668_v21  ;;  %v653_v26 = vand.u32 4294901760, %v652_v56  ;;  %v1984_v42 = vsub.f32 %v80_v45, %v1956_v35  ;;  %v71_v21 = vld [vmem:[#allocation5 + $0x38] sm:$0xff]  ;;  %v1997_v45 = vsub.f32 %v77_v19, %v1970_v49 }
  0x3e   :  { %563 = vmatpush.msrb.mxu2 %v1851_v57  ;;  %642 = vmatpush.msrb.mxu3 %v641_v14  ;;  %v1978_v14 = vand.u32 4294901760, %v171_v7  ;;  %v664_v20 = vsub.f32 %v1929_v12, %v2526_v39  ;;  %v659_v7 = vand.u32 4294901760, %v658_v30  ;;  %v1994_v31 = vand.u32 4294901760, %v1968_v16 }
  0x3f   :  { %447 = vmatpush.msrb.mxu0 %v2525_v3  ;;  %508 = vmatpush.msrb.mxu1 %v1638_v4  ;;  %v2527_v4 = vand.u32 4294901760, %v1680_v28  ;;  %v1989_v3 = vand.u32 4294901760, %v74_v52  ;;  %v2529_v28 = vand.u32 4294901760, %v1949_v44 }
  0x40   :  { %408 = vmatmul.f32.gmra.mxu3 %v1866_v23  ;;  %565 = vmatpush.msrb.mxu2 %v1868_v37  ;;  %v665_v30 = vand.u32 4294901760, %v664_v20  ;;  %v179_v20 = vsub.f32 %v1968_v16, %v1994_v31 }
  0x41   :  { %648 = vmatpush.msrb.mxu3 %v647_v33  ;;  %451 = vmatpush.msrb.mxu0 %v2527_v4  ;;  %v2528_v33 = vand.u32 4294901760, %v1706_v40  ;;  %v670_v39 = vsub.f32 %v1949_v44, %v2529_v28  ;;  %v2004_v4 = vand.u32 4294901760, %v71_v21  ;;  %v2530_v40 = vand.u32 4294901760, %v1961_v6 }
  0x42   :  { %510 = vmatpush.msrb.mxu1 %v1640_v5  ;;  %567 = vmatpush.msrb.mxu2 %v1888_v60  ;;  %v68_v5 = vld [vmem:[#allocation5 + $0x20] sm:$0xff]  ;;  %v2533_v28 = vand.u32 4294901760, %v1725_v48  ;;  %v2535_v48 = vand.u32 4294901760, %v1739_v58 }
  0x43   :  { %654 = vmatpush.msrb.mxu3 %v653_v26  ;;  %455 = vmatpush.msrb.mxu0 %v2528_v33  ;;  %v676_v19 = vsub.f32 %v1961_v6, %v2530_v40  ;;  %v2015_v26 = vsub.f32 %v74_v52, %v1989_v3  ;;  %v65_v33 = vld [vmem:[#allocation5 + $0x8] sm:$0xff]  ;;  %v2022_v56 = vand.u32 4294901760, %v68_v5  ;;  %v671_v40 = vand.u32 4294901760, %v670_v39 }
  0x44   :  { %512 = vmatpush.msrb.mxu1 %v1642_v9  ;;  %173 = vmatmul.f32.gmra.mxu0 %v1978_v14  ;;  %v2531_v9 = vand.u32 4294901760, %v1710_v41  ;;  %v2027_v52 = vsub.f32 %v71_v21, %v2004_v4  ;;  %v2532_v41 = vand.u32 4294901760, %v1984_v42  ;;  %v2041_v21 = vand.u32 4294901760, %v179_v20 }
  0x45   :  { %286 = vmatmul.f32.gmra.mxu1 %v1806_v63  ;;  %569 = vmatpush.msrb.mxu2 %v1904_v22  ;;  %v693_v39 = vand.u32 4294901760, %v2015_v26  ;;  %v2047_v23 = vsub.f32 %v68_v5, %v2022_v56 }
  0x46   :  { %660 = vmatpush.msrb.mxu3 %v659_v7  ;;  %459 = vmatpush.msrb.mxu0 %v2531_v9  ;;  %v682_v7 = vsub.f32 %v1984_v42, %v2532_v41  ;;  %v2033_v9 = vand.u32 4294901760, %v65_v33 }
  0x47   :  { %514 = vmatpush.msrb.mxu1 %v1644_v10  ;;  %358 = vmatmul.f32.gmra.mxu2 %v1902_v53  ;;  %v677_v10 = vand.u32 4294901760, %v676_v19  ;;  %v694_v5 = vsub.f32 %v2015_v26, %v693_v39 }
  0x48   :  { %571 = vmatpush.msrb.mxu2 %v1921_v18  ;;  %666 = vmatpush.msrb.mxu3 %v665_v30  ;;  %v2534_v30 = vand.u32 4294901760, %v1997_v45  ;;  %v683_v19 = vand.u32 4294901760, %v682_v7  ;;  %v2055_v20 = vsub.f32 %v65_v33, %v2033_v9  ;;  %v2537_v33 = vand.u32 4294901760, %v1764_v13 }
  0x49   :  { %463 = vmatpush.msrb.mxu0 %v2533_v28  ;;  %516 = vmatpush.msrb.mxu1 %v1646_v11  ;;  %v699_v11 = vand.u32 4294901760, %v2027_v52  ;;  %v2536_v28 = vand.u32 4294901760, %v1751_v0 }
  0x4a   :  { %414 = vmatmul.f32.gmra.mxu3 %v1926_v43  ;;  %573 = vmatpush.msrb.mxu2 %v1935_v15  ;;  %v688_v41 = vsub.f32 %v1997_v45, %v2534_v30  ;;  %v2539_v30 = vand.u32 4294901760, %v1798_v55  ;;  %v2542_v55 = vld [vmem:[#allocation20_spill] sm:$0xff] }
  0x4b   :  { %672 = vmatpush.msrb.mxu3 %v671_v40  ;;  %467 = vmatpush.msrb.mxu0 %v2535_v48  ;;  %v700_v0 = vsub.f32 %v2027_v52, %v699_v11  ;;  %v711_v40 = vand.u32 4294901760, %v2055_v20  ;;  %v2544_v48 = vld [vmem:[#allocation12_spill] sm:$0xff] }
  0x4c   :  { %518 = vmatpush.msrb.mxu1 %v1659_v17  ;;  %575 = vmatpush.msrb.mxu2 %v1956_v35  ;;  %v689_v58 = vand.u32 4294901760, %v688_v41  ;;  %v705_v17 = vand.u32 4294901760, %v2047_v23 }
  0x4d   :  { %678 = vmatpush.msrb.mxu3 %v677_v10  ;;  %471 = vmatpush.msrb.mxu0 %v2536_v28  ;;  %v2538_v10 = vand.u32 4294901760, %v1781_v38  ;;  %v701_v13 = vand.u32 4294901760, %v700_v0  ;;  %v2552_v0 = vand.u32 4294901760, %v1883_v1 }
  0x4e   :  { %520 = vmatpush.msrb.mxu1 %v1675_v25  ;;  %181 = vmatmul.f32.gmra.mxu0 %v2041_v21  ;;  %v695_v25 = vand.u32 4294901760, %v694_v5  ;;  %v706_v7 = vsub.f32 %v2047_v23, %v705_v17  ;;  %v2549_v5 = vld [vmem:[#allocation15_spill] sm:$0xff] }
  0x4f   :  { %290 = vmatmul.f32.gmra.mxu1 %v1875_v27  ;;  %577 = vmatpush.msrb.mxu2 %v1970_v49 }
  0x50   :  { %684 = vmatpush.msrb.mxu3 %v683_v19  ;;  %475 = vmatpush.msrb.mxu0 %v2537_v33  ;;  %v707_v38 = vand.u32 4294901760, %v706_v7  ;;  %v2547_v19 = vld [vmem:[#allocation19_spill] sm:$0xff]  ;;  %v2553_v33 = vld [vmem:[#allocation22_spill] sm:$0xff] }
  0x51   :  { %522 = vmatpush.msrb.mxu1 %v1682_v29  ;;  %363 = vmatmul.f32.gmra.mxu2 %v1968_v16  ;;  %v712_v29 = vsub.f32 %v2055_v20, %v711_v40  ;;  %v2548_v28 = vand.u32 4294901760, %v2547_v19  ;;  %v90_v7 = vld [vmem:[#allocation5 + $0xd0] sm:$0xff] }
  0x52   :  { %579 = vmatpush.msrb.mxu2 %v1989_v3  ;;  %690 = vmatpush.msrb.mxu3 %v689_v58  ;;  %v2551_v58 = vld [vmem:[#allocation23_spill] sm:$0xff] }
  0x53   :  { %479 = vmatpush.msrb.mxu0 %v2538_v10  ;;  %524 = vmatpush.msrb.mxu1 %v1697_v34  ;;  %v2540_v34 = vand.u32 4294901760, %v1813_v8  ;;  %v713_v41 = vand.u32 4294901760, %v712_v29 }
  0x54   :  { %420 = vmatmul.f32.gmra.mxu3 %v1994_v31  ;;  %581 = vmatpush.msrb.mxu2 %v2004_v4 }
  0x55   :  { %696 = vmatpush.msrb.mxu3 %v695_v25  ;;  %483 = vmatpush.msrb.mxu0 %v2539_v30 }
  0x56   :  { %526 = vmatpush.msrb.mxu1 %v1717_v46  ;;  %583 = vmatpush.msrb.mxu2 %v2022_v56  ;;  %v2541_v46 = vld [vmem:[#allocation17_spill] sm:$0xff] }
  0x57   :  { %702 = vmatpush.msrb.mxu3 %v701_v13  ;;  %487 = vmatpush.msrb.mxu0 %v2540_v34  ;;  %v2543_v8 = vand.u32 4294901760, %v2541_v46  ;;  %v2237_v34 = vand.u32 4294901760, %v90_v7 }
  0x58   :  { %528 = vmatpush.msrb.mxu1 %v1728_v51  ;;  %489 = vmatmul.f32.vlgmr.msrb.gmra.mxu0 %v1755_v2  ;;  %v2545_v51 = vand.u32 4294901760, %v1823_v32 }
  0x59   :  { %294 = vmatmul.f32.gmra.mxu1 %v1941_v50  ;;  %585 = vmatpush.msrb.mxu2 %v2033_v9 }
  0x5a   :  { %708 = vmatpush.msrb.mxu3 %v707_v38  ;;  %530 = vmatpush.msrb.mxu1 %v1741_v59  ;;  %v2546_v59 = vld [vmem:[#allocation13_spill] sm:$0xff] }
  0x5b   :  { %734 = vmatpush.msra.mxu0 %v2541_v46  ;;  %591 = vmatmul.f32.vlgmr.msrb.gmra.mxu2 %v2542_v55  ;;  %v2563_v46 = vld [vmem:[#allocation18_spill] sm:$0xff] }
  0x5c   :  { %714 = vmatpush.msrb.mxu3 %v713_v41  ;;  %861 = vmatpush.msra.mxu2 %v2543_v8  ;;  %v87_v41 = vld [vmem:[#allocation5 + $0xb8] sm:$0xff] }
  0x5d   :  { %532 = vmatpush.msrb.mxu1 %v2544_v48  ;;  %737 = vmatpush.msra.mxu0 %v1823_v32  ;;  %v2550_v32 = vand.u32 4294901760, %v1858_v24 }
  0x5e   :  { %716 = vmatmul.f32.vlgmr.msrb.gmra.mxu3 %v1755_v2  ;;  %865 = vmatpush.msra.mxu2 %v2545_v51 }
  0x5f   :  { %940 = vmatpush.msra.mxu3 %v1777_v36  ;;  %534 = vmatpush.msrb.mxu1 %v2546_v59  ;;  %v84_v59 = vld [vmem:[#allocation5 + $0xa0] sm:$0xff] }
  0x60   :  { %740 = vmatpush.msra.mxu0 %v2547_v19  ;;  %869 = vmatpush.msra.mxu2 %v2548_v28  ;;  %v2249_v28 = vand.u32 4294901760, %v87_v41 }
  0x61   :  { %942 = vmatpush.msra.mxu3 %v1791_v47  ;;  %536 = vmatpush.msrb.mxu1 %v2549_v5 }
  0x62   :  { %743 = vmatpush.msra.mxu0 %v1858_v24  ;;  %538 = vmatmul.f32.vlgmr.msrb.gmra.mxu1 %v1755_v2  ;;  %v2554_v24 = vand.u32 4294901760, %v2553_v33 }
  0x63   :  { %493 = vmatmul.f32.gmra.mxu0 %v1806_v63  ;;  %873 = vmatpush.msra.mxu2 %v2550_v32  ;;  %v1096_v32 = vsub.f32 %v90_v7, %v2237_v34 }
  0x64   :  { %944 = vmatpush.msra.mxu3 %v1816_v61  ;;  %746 = vmatpush.msra.mxu0 %v1883_v1  ;;  %v2555_v1 = vand.u32 4294901760, %v1915_v62 }
  0x65   :  { %802 = vmatpush.msra.mxu1 %v1777_v36  ;;  %599 = vmatmul.f32.gmra.mxu2 %v2551_v58  ;;  %v2556_v36 = vand.u32 4294901760, %v1929_v12 }
  0x66   :  { %877 = vmatpush.msra.mxu2 %v2552_v0  ;;  %946 = vmatpush.msra.mxu3 %v1830_v54 }
  0x67   :  { %749 = vmatpush.msra.mxu0 %v2553_v33  ;;  %804 = vmatpush.msra.mxu1 %v1791_v47  ;;  %v2559_v47 = vand.u32 4294901760, %v1984_v42  ;;  %v2255_v33 = vand.u32 4294901760, %v84_v59 }
  0x68   :  { %720 = vmatmul.f32.gmra.mxu3 %v1806_v63  ;;  %881 = vmatpush.msra.mxu2 %v2554_v24  ;;  %v81_v24 = vld [vmem:[#allocation5 + $0x88] sm:$0xff] }
  0x69   :  { %948 = vmatpush.msra.mxu3 %v1851_v57  ;;  %752 = vmatpush.msra.mxu0 %v1915_v62  ;;  %v105_v62 = vld [vmem:[#allocation5 + $0x148] sm:$0xff] }
  0x6a   :  { %806 = vmatpush.msra.mxu1 %v1816_v61  ;;  %885 = vmatpush.msra.mxu2 %v2555_v1  ;;  %v2557_v61 = vand.u32 4294901760, %v1949_v44 }
  0x6b   :  { %950 = vmatpush.msra.mxu3 %v1868_v37  ;;  %755 = vmatpush.msra.mxu0 %v1929_v12  ;;  %v102_v12 = vld [vmem:[#allocation5 + $0x130] sm:$0xff] }
  0x6c   :  { %808 = vmatpush.msra.mxu1 %v1830_v54  ;;  %497 = vmatmul.f32.gmra.mxu0 %v1875_v27  ;;  %v2558_v54 = vand.u32 4294901760, %v1961_v6 }
  0x6d   :  { %542 = vmatmul.f32.gmra.mxu1 %v1806_v63  ;;  %889 = vmatpush.msra.mxu2 %v2556_v36 }
  0x6e   :  { %952 = vmatpush.msra.mxu3 %v1888_v60  ;;  %758 = vmatpush.msra.mxu0 %v1949_v44 }
  0x6f   :  { %810 = vmatpush.msra.mxu1 %v1851_v57  ;;  %607 = vmatmul.f32.gmra.mxu2 %v1978_v14  ;;  %v111_v57 = vld [vmem:[#allocation5 + $0x178] sm:$0xff] }
  0x70   :  { %893 = vmatpush.msra.mxu2 %v2557_v61  ;;  %954 = vmatpush.msra.mxu3 %v1904_v22  ;;  %v1102_v61 = vsub.f32 %v87_v41, %v2249_v28 }
  0x71   :  { %761 = vmatpush.msra.mxu0 %v1961_v6  ;;  %812 = vmatpush.msra.mxu1 %v1868_v37  ;;  %v2560_v37 = vand.u32 4294901760, %v1997_v45  ;;  %v2561_v6 = vld [vmem:[#allocation14_spill] sm:$0xff] }
  0x72   :  { %724 = vmatmul.f32.gmra.mxu3 %v1875_v27  ;;  %897 = vmatpush.msra.mxu2 %v2558_v54 }
  0x73   :  { %956 = vmatpush.msra.mxu3 %v1921_v18  ;;  %764 = vmatpush.msra.mxu0 %v1984_v42  ;;  %v108_v42 = vld [vmem:[#allocation5 + $0x160] sm:$0xff] }
  0x74   :  { %814 = vmatpush.msra.mxu1 %v1888_v60  ;;  %901 = vmatpush.msra.mxu2 %v2559_v47  ;;  %v2171_v60 = vand.u32 4294901760, %v111_v57  ;;  %v78_v47 = vld [vmem:[#allocation5 + $0x70] sm:$0xff] }
  0x75   :  { %958 = vmatpush.msra.mxu3 %v1935_v15  ;;  %767 = vmatpush.msra.mxu0 %v1997_v45  ;;  %v2196_v45 = vand.u32 4294901760, %v102_v12 }
  0x76   :  { %816 = vmatpush.msra.mxu1 %v1904_v22  ;;  %501 = vmatmul.f32.gmra.mxu0 %v1941_v50  ;;  %v2178_v22 = vand.u32 4294901760, %v108_v42 }
  0x77   :  { %546 = vmatmul.f32.gmra.mxu1 %v1875_v27  ;;  %905 = vmatpush.msra.mxu2 %v2560_v37  ;;  %v2266_v37 = vand.u32 4294901760, %v81_v24 }
  0x78   :  { %960 = vmatpush.msra.mxu3 %v1956_v35  ;;  %770 = vmatpush.msra.mxu0 %v2015_v26  ;;  %v1060_v44 = vsub.f32 %v108_v42, %v2178_v22  ;;  %v99_v26 = vld [vmem:[#allocation5 + $0x118] sm:$0xff] }
  0x79   :  { %818 = vmatpush.msra.mxu1 %v1921_v18  ;;  %615 = vmatmul.f32.gmra.mxu2 %v2041_v21  ;;  %v1054_v18 = vsub.f32 %v111_v57, %v2171_v60  ;;  %v2264_v57 = vand.u32 4294901760, %v1096_v32 }
  0x7a   :  { %909 = vmatpush.msra.mxu2 %v693_v39  ;;  %962 = vmatpush.msra.mxu3 %v1970_v49  ;;  %v2210_v39 = vand.u32 4294901760, %v99_v26 }
  0x7b   :  { %773 = vmatpush.msra.mxu0 %v2027_v52  ;;  %820 = vmatpush.msra.mxu1 %v1935_v15  ;;  %v2189_v15 = vand.u32 4294901760, %v105_v62  ;;  %v96_v52 = vld [vmem:[#allocation5 + $0x100] sm:$0xff] }
  0x7c   :  { %728 = vmatmul.f32.gmra.mxu3 %v1941_v50  ;;  %913 = vmatpush.msra.mxu2 %v699_v11  ;;  %v1072_v11 = vsub.f32 %v102_v12, %v2196_v45  ;;  %v1078_v25 = vsub.f32 %v99_v26, %v2210_v39  ;;  %v2564_v26 = vld [vmem:[#allocation21_spill] sm:$0xff] }
  0x7d   :  { %964 = vmatpush.msra.mxu3 %v1989_v3  ;;  %776 = vmatpush.msra.mxu0 %v2047_v23  ;;  %v2201_v23 = vand.u32 4294901760, %v1054_v18 }
  0x7e   :  { %822 = vmatpush.msra.mxu1 %v1956_v35  ;;  %917 = vmatpush.msra.mxu2 %v705_v17  ;;  %v1066_v35 = vsub.f32 %v105_v62, %v2189_v15  ;;  %v93_v17 = vld [vmem:[#allocation5 + $0xe8] sm:$0xff]  ;;  %v2227_v10 = vand.u32 4294901760, %v1072_v11  ;;  %v2240_v8 = vand.u32 4294901760, %v1078_v25  ;;  %v1108_v62 = vsub.f32 %v84_v59, %v2255_v33  ;;  %v66_v59 = vld [vmem:[#allocation5 + $0x10] sm:$0xff] }
  0x7f   :  { %966 = vmatpush.msra.mxu3 %v2004_v4  ;;  %779 = vmatpush.msra.mxu0 %v2055_v20  ;;  %v2217_v20 = vand.u32 4294901760, %v96_v52  ;;  %v2229_v13 = vand.u32 4294901760, %v93_v17 }
  0x80   :  { %824 = vmatpush.msra.mxu1 %v1970_v49  ;;  %782 = vmatmul.f32.vlgmr.msra.gmra.mxu0 %v2561_v6  ;;  %v2208_v49 = vand.u32 4294901760, %v1060_v44  ;;  %v1074_v51 = vsub.f32 %v1072_v11, %v2227_v10  ;;  %v1080_v0 = vsub.f32 %v1078_v25, %v2240_v8 }
  0x81   :  { %550 = vmatmul.f32.gmra.mxu1 %v1941_v50  ;;  %921 = vmatpush.msra.mxu2 %v711_v40  ;;  %v2220_v40 = vand.u32 4294901760, %v1066_v35  ;;  %v1084_v30 = vsub.f32 %v96_v52, %v2217_v20 }
  0x82   :  { %968 = vmatpush.msra.mxu3 %v2022_v56  ;;  %826 = vmatpush.msra.mxu1 %v1989_v3  ;;  %v1056_v3 = vsub.f32 %v1054_v18, %v2201_v23  ;;  %v1075_v36 = vand.u32 4294901760, %v1074_v51  ;;  %v1081_v42 = vand.u32 4294901760, %v1080_v0 }
  0x83   :  { %989 = vmatpush.msrb.mxu0 %v2171_v60  ;;  %923 = vmatmul.f32.vlgmr.msra.gmra.mxu2 %v1755_v2  ;;  %v1068_v38 = vsub.f32 %v1066_v35, %v2220_v40  ;;  %v2247_v19 = vand.u32 4294901760, %v1084_v30 }
  0x84   :  { %970 = vmatpush.msra.mxu3 %v2033_v9  ;;  %1168 = vmatpush.msrb.mxu2 %v1054_v18  ;;  %v1057_v29 = vand.u32 4294901760, %v1056_v3  ;;  %v75_v18 = vld [vmem:[#allocation5 + $0x58] sm:$0xff]  ;;  %v1098_v3 = vsub.f32 %v1096_v32, %v2264_v57 }
  0x85   :  { %828 = vmatpush.msra.mxu1 %v2004_v4  ;;  %991 = vmatpush.msrb.mxu0 %v2178_v22  ;;  %v1062_v4 = vsub.f32 %v1060_v44, %v2208_v49  ;;  %v1069_v5 = vand.u32 4294901760, %v1068_v38  ;;  %v1086_v54 = vsub.f32 %v1084_v30, %v2247_v19 }
  0x86   :  { %972 = vmatmul.f32.vlgmr.msra.gmra.mxu3 %v1755_v2  ;;  %1171 = vmatpush.msrb.mxu2 %v1060_v44  ;;  %v2273_v44 = vand.u32 4294901760, %v78_v47 }
  0x87   :  { %1236 = vmatpush.msrb.mxu3 %v2171_v60  ;;  %830 = vmatpush.msra.mxu1 %v2022_v56  ;;  %v2562_v56 = vld [vmem:[#allocation16_spill] sm:$0xff]  ;;  %v1063_v48 = vand.u32 4294901760, %v1062_v4  ;;  %v1087_v52 = vand.u32 4294901760, %v1086_v54  ;;  %v2285_v4 = vand.u32 4294901760, %v1108_v62 }
  0x88   :  { %993 = vmatpush.msrb.mxu0 %v2189_v15  ;;  %1174 = vmatpush.msrb.mxu2 %v1066_v35  ;;  %v2276_v35 = vand.u32 4294901760, %v1102_v61 }
  0x89   :  { %1238 = vmatpush.msrb.mxu3 %v2178_v22  ;;  %832 = vmatpush.msra.mxu1 %v2033_v9  ;;  %v1090_v9 = vsub.f32 %v93_v17, %v2229_v13  ;;  %v2282_v17 = vand.u32 4294901760, %v75_v18 }
  0x8a   :  { %995 = vmatpush.msrb.mxu0 %v2196_v45  ;;  %836 = vmatmul.f32.vlgmr.msra.gmra.mxu1 %v2562_v56  ;;  %v1104_v38 = vsub.f32 %v1102_v61, %v2276_v35 }
  0x8b   :  { %787 = vmatmul.f32.gmra.mxu0 %v2563_v46  ;;  %1177 = vmatpush.msrb.mxu2 %v1072_v11  ;;  %v2258_v1 = vand.u32 4294901760, %v1090_v9  ;;  %v1114_v11 = vsub.f32 %v81_v24, %v2266_v37  ;;  %v1126_v51 = vsub.f32 %v75_v18, %v2282_v17 }
  0x8c   :  { %1240 = vmatpush.msrb.mxu3 %v2189_v15  ;;  %997 = vmatpush.msrb.mxu0 %v2210_v39  ;;  %v1105_v24 = vand.u32 4294901760, %v1104_v38 }
  0x8d   :  { %1058 = vmatpush.msrb.mxu1 %v1057_v29  ;;  %927 = vmatmul.f32.gmra.mxu2 %v1806_v63  ;;  %v1092_v12 = vsub.f32 %v1090_v9, %v2258_v1  ;;  %v1120_v29 = vsub.f32 %v78_v47, %v2273_v44  ;;  %v2310_v54 = vand.u32 4294901760, %v1126_v51 }
  0x8e   :  { %1180 = vmatpush.msrb.mxu2 %v1078_v25  ;;  %1242 = vmatpush.msrb.mxu3 %v2196_v45  ;;  %v72_v25 = vld [vmem:[#allocation5 + $0x40] sm:$0xff] }
  0x8f   :  { %999 = vmatpush.msrb.mxu0 %v2217_v20  ;;  %1064 = vmatpush.msrb.mxu1 %v1063_v48  ;;  %v1093_v7 = vand.u32 4294901760, %v1092_v12  ;;  %v2291_v41 = vand.u32 4294901760, %v72_v25  ;;  %v2294_v48 = vand.u32 4294901760, %v1114_v11  ;;  %v2302_v0 = vand.u32 4294901760, %v1120_v29 }
  0x90   :  { %976 = vmatmul.f32.gmra.mxu3 %v1806_v63  ;;  %1183 = vmatpush.msrb.mxu2 %v1084_v30  ;;  %v69_v30 = vld [vmem:[#allocation5 + $0x28] sm:$0xff] }
  0x91   :  { %1244 = vmatpush.msrb.mxu3 %v2210_v39  ;;  %1001 = vmatpush.msrb.mxu0 %v2229_v13  ;;  %v1116_v47 = vsub.f32 %v1114_v11, %v2294_v48  ;;  %v1122_v18 = vsub.f32 %v1120_v29, %v2302_v0 }
  0x92   :  { %1070 = vmatpush.msrb.mxu1 %v1069_v5  ;;  %1186 = vmatpush.msrb.mxu2 %v1090_v9  ;;  %v1099_v9 = vand.u32 4294901760, %v1098_v3  ;;  %v1110_v5 = vsub.f32 %v1108_v62, %v2285_v4  ;;  %v1128_v3 = vsub.f32 %v1126_v51, %v2310_v54 }
  0x93   :  { %1246 = vmatpush.msrb.mxu3 %v2217_v20  ;;  %1003 = vmatpush.msrb.mxu0 %v2237_v34 }
  0x94   :  { %1076 = vmatpush.msrb.mxu1 %v1075_v36  ;;  %792 = vmatmul.f32.gmra.mxu0 %v1902_v53  ;;  %v1132_v36 = vsub.f32 %v72_v25, %v2291_v41  ;;  %v1129_v38 = vand.u32 4294901760, %v1128_v3 }
  0x95   :  { %842 = vmatmul.f32.gmra.mxu1 %v2564_v26  ;;  %1189 = vmatpush.msrb.mxu2 %v1096_v32  ;;  %v2300_v32 = vand.u32 4294901760, %v69_v30 }
  0x96   :  { %1248 = vmatpush.msrb.mxu3 %v2229_v13  ;;  %1005 = vmatpush.msrb.mxu0 %v2249_v28  ;;  %v2319_v12 = vand.u32 4294901760, %v1132_v36 }
  0x97   :  { %1082 = vmatpush.msrb.mxu1 %v1081_v42  ;;  %931 = vmatmul.f32.gmra.mxu2 %v1875_v27  ;;  %v1111_v42 = vand.u32 4294901760, %v1110_v5 }
  0x98   :  { %1192 = vmatpush.msrb.mxu2 %v1102_v61  ;;  %1250 = vmatpush.msrb.mxu3 %v2237_v34  ;;  %v2307_v61 = vand.u32 4294901760, %v66_v59 }
  0x99   :  { %1007 = vmatpush.msrb.mxu0 %v2255_v33  ;;  %1088 = vmatpush.msrb.mxu1 %v1087_v52 }
  0x9a   :  { %980 = vmatmul.f32.gmra.mxu3 %v1875_v27  ;;  %1195 = vmatpush.msrb.mxu2 %v1108_v62  ;;  %v1138_v62 = vsub.f32 %v69_v30, %v2300_v32  ;;  %v1144_v52 = vsub.f32 %v66_v59, %v2307_v61  ;;  %v1134_v30 = vsub.f32 %v1132_v36, %v2319_v12 }
  0x9b   :  { %1252 = vmatpush.msrb.mxu3 %v2249_v28  ;;  %1009 = vmatpush.msrb.mxu0 %v2266_v37 }
  0x9c   :  { %1094 = vmatpush.msrb.mxu1 %v1093_v7  ;;  %1198 = vmatpush.msrb.mxu2 %v1114_v11  ;;  %v1117_v11 = vand.u32 4294901760, %v1116_v47  ;;  %v2325_v25 = vand.u32 4294901760, %v1138_v62  ;;  %v1123_v7 = vand.u32 4294901760, %v1122_v18 }
  0x9d   :  { %1254 = vmatpush.msrb.mxu3 %v2255_v33  ;;  %1011 = vmatpush.msrb.mxu0 %v2273_v44 }
  0x9e   :  { %1100 = vmatpush.msrb.mxu1 %v1099_v9  ;;  %797 = vmatmul.f32.gmra.mxu0 %v1968_v16  ;;  %v1140_v9 = vsub.f32 %v1138_v62, %v2325_v25 }
  0x9f   :  { %848 = vmatmul.f32.gmra.mxu1 %v1926_v43  ;;  %1201 = vmatpush.msrb.mxu2 %v1120_v29  ;;  %v2330_v29 = vand.u32 4294901760, %v1144_v52 }
  0xa0   :  { %1256 = vmatpush.msrb.mxu3 %v2266_v37  ;;  %1013 = vmatpush.msrb.mxu0 %v2282_v17  ;;  %v1141_v5 = vand.u32 4294901760, %v1140_v9 }
  0xa1   :  { %1106 = vmatpush.msrb.mxu1 %v1105_v24  ;;  %935 = vmatmul.f32.gmra.mxu2 %v1941_v50  ;;  %v1146_v59 = vsub.f32 %v1144_v52, %v2330_v29 }
  0xa2   :  { %1204 = vmatpush.msrb.mxu2 %v1126_v51  ;;  %1258 = vmatpush.msrb.mxu3 %v2273_v44  ;;  %v1135_v51 = vand.u32 4294901760, %v1134_v30 }
  0xa3   :  { %1015 = vmatpush.msrb.mxu0 %v2291_v41  ;;  %1112 = vmatpush.msrb.mxu1 %v1111_v42 }
  0xa4   :  { %984 = vmatmul.f32.gmra.mxu3 %v1941_v50  ;;  %1207 = vmatpush.msrb.mxu2 %v1132_v36 }
  0xa5   :  { %1260 = vmatpush.msrb.mxu3 %v2282_v17  ;;  %1017 = vmatpush.msrb.mxu0 %v2300_v32 }
  0xa6   :  { %1118 = vmatpush.msrb.mxu1 %v1117_v11  ;;  %1210 = vmatpush.msrb.mxu2 %v1138_v62 }
  0xa7   :  { %1262 = vmatpush.msrb.mxu3 %v2291_v41  ;;  %1019 = vmatpush.msrb.mxu0 %v2307_v61 }
  0xa8   :  { %1124 = vmatpush.msrb.mxu1 %v1123_v7  ;;  %1025 = vmatmul.f32.vlgmr.msrb.gmra.mxu0 %v2542_v55  ;;  %v1147_v55 = vand.u32 4294901760, %v1146_v59 }
  0xa9   :  { %854 = vmatmul.f32.gmra.mxu1 %v1994_v31  ;;  %1213 = vmatpush.msrb.mxu2 %v1144_v52 }
  0xaa   :  { %1264 = vmatpush.msrb.mxu3 %v2300_v32  ;;  %1130 = vmatpush.msrb.mxu1 %v1129_v38 }
  0xab   :  { %1295 = vmatpush.msra.mxu0 %v2201_v23  ;;  %1216 = vmatmul.f32.vlgmr.msrb.gmra.mxu2 %v2561_v6 }
  0xac   :  { %1266 = vmatpush.msrb.mxu3 %v2307_v61  ;;  %1454 = vmatpush.msra.mxu2 %v2201_v23 }
  0xad   :  { %1136 = vmatpush.msrb.mxu1 %v1135_v51  ;;  %1299 = vmatpush.msra.mxu0 %v2208_v49 }
  0xae   :  { %1270 = vmatmul.f32.vlgmr.msrb.gmra.mxu3 %v2562_v56  ;;  %1455 = vmatpush.msra.mxu2 %v2208_v49  ;;  %v2351_v6 = vpop.f32.mrf.mxu0 }
  0xaf   :  { %1470 = vmatpush.msra.mxu3 %v2171_v60  ;;  %1142 = vmatpush.msrb.mxu1 %v1141_v5 }
  0xb0   :  { %1303 = vmatpush.msra.mxu0 %v2220_v40  ;;  %1456 = vmatpush.msra.mxu2 %v2220_v40 }
  0xb1   :  { %1471 = vmatpush.msra.mxu3 %v2178_v22  ;;  %1148 = vmatpush.msrb.mxu1 %v1147_v55 }
  0xb2   :  { %1307 = vmatpush.msra.mxu0 %v2227_v10  ;;  %1150 = vmatmul.f32.vlgmr.msrb.gmra.mxu1 %v1755_v2 }
  0xb3   :  { %1033 = vmatmul.f32.gmra.mxu0 %v2551_v58  ;;  %1457 = vmatpush.msra.mxu2 %v2227_v10 }
  0xb4   :  { %1472 = vmatpush.msra.mxu3 %v2189_v15  ;;  %1311 = vmatpush.msra.mxu0 %v2240_v8 }
  0xb5   :  { %1374 = vmatpush.msra.mxu1 %v2171_v60  ;;  %1221 = vmatmul.f32.gmra.mxu2 %v2563_v46 }
  0xb6   :  { %1458 = vmatpush.msra.mxu2 %v2240_v8  ;;  %1473 = vmatpush.msra.mxu3 %v2196_v45 }
  0xb7   :  { %1315 = vmatpush.msra.mxu0 %v2247_v19  ;;  %1376 = vmatpush.msra.mxu1 %v2178_v22  ;;  %v2365_v23 = vpop.f32.mrf.mxu2  ;;  %v2369_v58 = vpop.f32.mrf.mxu1 }
  0xb8   :  { %1276 = vmatmul.f32.gmra.mxu3 %v2564_v26  ;;  %1459 = vmatpush.msra.mxu2 %v2247_v19  ;;  %v2379_v22 = vpop.f32.mrf.mxu0 }
  0xb9   :  { %1474 = vmatpush.msra.mxu3 %v2210_v39  ;;  %1319 = vmatpush.msra.mxu0 %v2258_v1  ;;  %v2373_v60 = vpop.f32.mrf.mxu3 }
  0xba   :  { %1378 = vmatpush.msra.mxu1 %v2189_v15  ;;  %1460 = vmatpush.msra.mxu2 %v2258_v1 }
  0xbb   :  { %1475 = vmatpush.msra.mxu3 %v2217_v20  ;;  %1323 = vmatpush.msra.mxu0 %v2264_v57 }
  0xbc   :  { %1380 = vmatpush.msra.mxu1 %v2196_v45  ;;  %1041 = vmatmul.f32.gmra.mxu0 %v1978_v14 }
  0xbd   :  { %1154 = vmatmul.f32.gmra.mxu1 %v1806_v63  ;;  %1461 = vmatpush.msra.mxu2 %v2264_v57 }
  0xbe   :  { %1476 = vmatpush.msra.mxu3 %v2229_v13  ;;  %1327 = vmatpush.msra.mxu0 %v2276_v35 }
  0xbf   :  { %1382 = vmatpush.msra.mxu1 %v2210_v39  ;;  %1226 = vmatmul.f32.gmra.mxu2 %v1902_v53 }
  0xc0   :  { %1462 = vmatpush.msra.mxu2 %v2276_v35  ;;  %1477 = vmatpush.msra.mxu3 %v2237_v34  ;;  %v2391_v15 = vpop.f32.mrf.mxu2 }
  0xc1   :  { %1331 = vmatpush.msra.mxu0 %v2285_v4  ;;  %1384 = vmatpush.msra.mxu1 %v2217_v20  ;;  %v174_v45 = vpop.f32.mrf.mxu0 }
  0xc2   :  { %1282 = vmatmul.f32.gmra.mxu3 %v1926_v43  ;;  %1463 = vmatpush.msra.mxu2 %v2285_v4  ;;  %v287_v14 = vpop.f32.mrf.mxu1  ;;  %v2413_v43 = vld [vmem:[#allocation7] sm:$0x7] }
  0xc3   :  { %1478 = vmatpush.msra.mxu3 %v2249_v28  ;;  %1335 = vmatpush.msra.mxu0 %v2294_v48  ;;  %v2399_v53 = vpop.f32.mrf.mxu3  ;;  %v115_v3 = vperm.slane %v2413_v43, 1 }
  0xc4   :  { %1386 = vmatpush.msra.mxu1 %v2229_v13  ;;  %1464 = vmatpush.msra.mxu2 %v2294_v48 }
  0xc5   :  { %1479 = vmatpush.msra.mxu3 %v2255_v33  ;;  %1339 = vmatpush.msra.mxu0 %v2302_v0 }
  0xc6   :  { %1388 = vmatpush.msra.mxu1 %v2237_v34  ;;  %1049 = vmatmul.f32.gmra.mxu0 %v2041_v21  ;;  %v114_v21 = vperm.slane %v2413_v43, 0 }
  0xc7   :  { %1158 = vmatmul.f32.gmra.mxu1 %v1875_v27  ;;  %1465 = vmatpush.msra.mxu2 %v2302_v0 }
  0xc8   :  { %1480 = vmatpush.msra.mxu3 %v2266_v37  ;;  %1343 = vmatpush.msra.mxu0 %v2310_v54  ;;  %v167_v8 = vadd.f32 %v2379_v22, %v114_v21  ;;  %v175_v26 = vadd.f32 %v174_v45, %v114_v21 }
  0xc9   :  { %1390 = vmatpush.msra.mxu1 %v2249_v28  ;;  %1231 = vmatmul.f32.gmra.mxu2 %v1968_v16 }
  0xca   :  { %1466 = vmatpush.msra.mxu2 %v2310_v54  ;;  %1481 = vmatpush.msra.mxu3 %v2273_v44  ;;  %v359_v49 = vpop.f32.mrf.mxu2 }
  0xcb   :  { %1347 = vmatpush.msra.mxu0 %v2319_v12  ;;  %1392 = vmatpush.msra.mxu1 %v2255_v33  ;;  %v182_v20 = vpop.f32.mrf.mxu0  ;;  %v288_v33 = vadd.f32 %v287_v14, %v167_v8 }
  0xcc   :  { %1288 = vmatmul.f32.gmra.mxu3 %v1994_v31  ;;  %1467 = vmatpush.msra.mxu2 %v2319_v12  ;;  %v291_v39 = vpop.f32.mrf.mxu1  ;;  %v159_v31 = vadd.f32 %v2351_v6, %v114_v21  ;;  %v183_v36 = vadd.f32 %v182_v20, %v114_v21 }
  0xcd   :  { %1482 = vmatpush.msra.mxu3 %v2282_v17  ;;  %1351 = vmatpush.msra.mxu0 %v2325_v25  ;;  %v415_v16 = vpop.f32.mrf.mxu3  ;;  %v292_v4 = vadd.f32 %v291_v39, %v175_v26 }
  0xce   :  { %1394 = vmatpush.msra.mxu1 %v2266_v37  ;;  %1468 = vmatpush.msra.mxu2 %v2325_v25  ;;  %v284_v40 = vadd.f32 %v2369_v58, %v159_v31 }
  0xcf   :  { %1483 = vmatpush.msra.mxu3 %v2291_v41  ;;  %1355 = vmatpush.msra.mxu0 %v2330_v29  ;;  %v360_v0 = vadd.f32 %v359_v49, %v292_v4 }
  0xd0   :  { %1396 = vmatpush.msra.mxu1 %v2273_v44  ;;  %1469 = vmatpush.msra.mxu2 %v2330_v29  ;;  %v350_v34 = vadd.f32 %v2365_v23, %v284_v40 }
  0xd1   :  { %1162 = vmatmul.f32.gmra.mxu1 %v1941_v50  ;;  %1357 = vmatmul.f32.vlgmr.msra.gmra.mxu0 %v1755_v2 }
  0xd2   :  { %1484 = vmatpush.msra.mxu3 %v2300_v32  ;;  %1398 = vmatpush.msra.mxu1 %v2282_v17  ;;  %v404_v19 = vadd.f32 %v2373_v60, %v350_v34 }
  0xd3   :  { %1365 = vmatmul.f32.vlgmr.msra.gmra.mxu2 %v1875_v27 }
  0xd4   :  { %1485 = vmatpush.msra.mxu3 %v2307_v61  ;;  %1400 = vmatpush.msra.mxu1 %v2291_v41  ;;  %v364_v10 = vpop.f32.mrf.mxu2 }
  0xd5   :  { %1414 = vmatmul.f32.vlgmr.msra.gmra.mxu3 %v1875_v27  ;;  %v490_v46 = vpop.f32.mrf.mxu0 }
  0xd6   :  { %1402 = vmatpush.msra.mxu1 %v2300_v32  ;;  %v295_v13 = vpop.f32.mrf.mxu1  ;;  %v491_v27 = vadd.f32 %v490_v46, %v404_v19 }
  0xd7   :  { %v421_v56 = vpop.f32.mrf.mxu3  ;;  %v296_v54 = vadd.f32 %v295_v13, %v183_v36 }
  0xd8   :  { %1404 = vmatpush.msra.mxu1 %v2307_v61  ;;  %v416_v61 = vadd.f32 %v415_v16, %v360_v0 }
  0xd9   :  { %1361 = vmatmul.f32.gmra.mxu0 %v1806_v63  ;;  %1406 = vmatmul.f32.vlgmr.msra.gmra.mxu1 %v1755_v2  ;;  %v355_v2 = vadd.f32 %v2391_v15, %v288_v33  ;;  %v365_v12 = vadd.f32 %v364_v10, %v296_v54 }
  0xdb   :  { %1369 = vmatmul.f32.gmra.mxu2 %v1941_v50  ;;  %v410_v35 = vadd.f32 %v2399_v53, %v355_v2  ;;  %v422_v11 = vadd.f32 %v421_v56, %v365_v12 }
  0xdd   :  { %1418 = vmatmul.f32.gmra.mxu3 %v1941_v50 }
  0xde   :  { %v592_v28 = vpop.f32.mrf.mxu2 }
  0xdf   :  { %v539_v1 = vpop.f32.mrf.mxu1  ;;  %v593_v9 = vadd.f32 %v592_v28, %v115_v3 }
  0xe0   :  { %v540_v57 = vadd.f32 %v539_v1, %v491_v27  ;;  %v494_v44 = vpop.f32.mrf.mxu0 }
  0xe1   :  { %1410 = vmatmul.f32.gmra.mxu1 %v1806_v63  ;;  %v717_v37 = vpop.f32.mrf.mxu3  ;;  %v495_v41 = vadd.f32 %v494_v44, %v410_v35 }
  0xe2   :  { %1422 = vst [vmem:[#allocation8] sm:$0xff] %v540_v57  ;;  %v718_v59 = vadd.f32 %v717_v37, %v593_v9 }
  0xe8   :  { %v600_v17 = vpop.f32.mrf.mxu2 }
  0xe9   :  { %v498_v24 = vpop.f32.mrf.mxu0  ;;  %v601_v22 = vadd.f32 %v600_v17, %v115_v3 }
  0xea   :  { %v543_v48 = vpop.f32.mrf.mxu1  ;;  %v499_v47 = vadd.f32 %v498_v24, %v416_v61 }
  0xeb   :  { %v544_v50 = vadd.f32 %v543_v48, %v495_v41  ;;  %v721_v32 = vpop.f32.mrf.mxu3 }
  0xec   :  { %v722_v53 = vadd.f32 %v721_v32, %v601_v22 }
  0xed   :  { %1425 = vst [vmem:[#allocation8 + $0x18] sm:$0xff] %v544_v50 }
  0xf2   :  { %v608_v63 = vpop.f32.mrf.mxu2 }
  0xf3   :  { %v502_v52 = vpop.f32.mrf.mxu0  ;;  %v609_v20 = vadd.f32 %v608_v63, %v115_v3 }
  0xf4   :  { %v547_v42 = vpop.f32.mrf.mxu1  ;;  %v503_v7 = vadd.f32 %v502_v52, %v422_v11 }
  0xf5   :  { %v548_v62 = vadd.f32 %v547_v42, %v499_v47  ;;  %v725_v18 = vpop.f32.mrf.mxu3  ;;  %v116_v47 = vperm.slane %v2413_v43, 2 }
  0xf6   :  { %v726_v13 = vadd.f32 %v725_v18, %v609_v20 }
  0xf7   :  { %1428 = vst [vmem:[#allocation8 + $0x30] sm:$0xff] %v548_v62 }
  0xfc   :  { %v616_v25 = vpop.f32.mrf.mxu2 }
  0xfd   :  { %v783_v51 = vpop.f32.mrf.mxu0  ;;  %v617_v27 = vadd.f32 %v616_v25, %v115_v3 }
  0xfe   :  { %v551_v29 = vpop.f32.mrf.mxu1  ;;  %v784_v5 = vadd.f32 %v783_v51, %v718_v59 }
  0xff   :  { %v552_v30 = vadd.f32 %v551_v29, %v503_v7  ;;  %v729_v38 = vpop.f32.mrf.mxu3 }
 0x100   :  { %v730_v57 = vadd.f32 %v729_v38, %v617_v27 }
 0x101   :  { %1431 = vst [vmem:[#allocation8 + $0x48] sm:$0xff] %v552_v30 }
 0x106   :  { %v924_v55 = vpop.f32.mrf.mxu2 }
 0x107   :  { %v837_v6 = vpop.f32.mrf.mxu1 }
 0x108   :  { %v838_v23 = vadd.f32 %v837_v6, %v784_v5  ;;  %v788_v15 = vpop.f32.mrf.mxu0 }
 0x109   :  { %v973_v58 = vpop.f32.mrf.mxu3  ;;  %v789_v49 = vadd.f32 %v788_v15, %v722_v53 }
 0x10a   :  { %v925_v60 = vadd.f32 %v924_v55, %v838_v23 }
 0x10c   :  { %v974_v14 = vadd.f32 %v973_v58, %v925_v60 }
 0x10e   :  { %1423 = vst [vmem:[#allocation8 + $0x8] sm:$0xff] %v974_v14 }
 0x110   :  { %v928_v45 = vpop.f32.mrf.mxu2 }
 0x111   :  { %v793_v31 = vpop.f32.mrf.mxu0 }
 0x112   :  { %v843_v21 = vpop.f32.mrf.mxu1  ;;  %v794_v34 = vadd.f32 %v793_v31, %v726_v13 }
 0x113   :  { %v844_v39 = vadd.f32 %v843_v21, %v789_v49  ;;  %v977_v16 = vpop.f32.mrf.mxu3 }
 0x115   :  { %v929_v40 = vadd.f32 %v928_v45, %v844_v39 }
 0x117   :  { %v978_v10 = vadd.f32 %v977_v16, %v929_v40 }
 0x119   :  { %1426 = vst [vmem:[#allocation8 + $0x20] sm:$0xff] %v978_v10 }
 0x11a   :  { %v932_v56 = vpop.f32.mrf.mxu2 }
 0x11b   :  { %v798_v28 = vpop.f32.mrf.mxu0 }
 0x11c   :  { %v849_v46 = vpop.f32.mrf.mxu1  ;;  %v799_v2 = vadd.f32 %v798_v28, %v730_v57 }
 0x11d   :  { %v850_v8 = vadd.f32 %v849_v46, %v794_v34  ;;  %v981_v19 = vpop.f32.mrf.mxu3 }
 0x11f   :  { %v933_v33 = vadd.f32 %v932_v56, %v850_v8 }
 0x121   :  { %v982_v1 = vadd.f32 %v981_v19, %v933_v33 }
 0x123   :  { %1429 = vst [vmem:[#allocation8 + $0x38] sm:$0xff] %v982_v1 }
 0x124   :  { %v936_v37 = vpop.f32.mrf.mxu2 }
 0x125   :  { %v1026_v4 = vpop.f32.mrf.mxu0 }
 0x126   :  { %v855_v44 = vpop.f32.mrf.mxu1  ;;  %v1027_v12 = vadd.f32 %v1026_v4, %v116_v47 }
 0x127   :  { %v856_v26 = vadd.f32 %v855_v44, %v799_v2  ;;  %v985_v35 = vpop.f32.mrf.mxu3 }
 0x129   :  { %v937_v17 = vadd.f32 %v936_v37, %v856_v26 }
 0x12b   :  { %v986_v41 = vadd.f32 %v985_v35, %v937_v17 }
 0x12d   :  { %1432 = vst [vmem:[#allocation8 + $0x50] sm:$0xff] %v986_v41 }
 0x12e   :  { %v1217_v48 = vpop.f32.mrf.mxu2 }
 0x12f   :  { %v1151_v50 = vpop.f32.mrf.mxu1 }
 0x130   :  { %v1034_v0 = vpop.f32.mrf.mxu0  ;;  %v1152_v11 = vadd.f32 %v1151_v50, %v1027_v12 }
 0x131   :  { %v1271_v32 = vpop.f32.mrf.mxu3  ;;  %v1035_v30 = vadd.f32 %v1034_v0, %v116_v47 }
 0x132   :  { %v1218_v38 = vadd.f32 %v1217_v48, %v1152_v11 }
 0x134   :  { %v1272_v5 = vadd.f32 %v1271_v32, %v1218_v38 }
 0x138   :  { %v1222_v24 = vpop.f32.mrf.mxu2 }
 0x139   :  { %v1042_v63 = vpop.f32.mrf.mxu0 }
 0x13a   :  { %v1155_v36 = vpop.f32.mrf.mxu1  ;;  %v1043_v52 = vadd.f32 %v1042_v63, %v116_v47 }
 0x13b   :  { %v1277_v61 = vpop.f32.mrf.mxu3  ;;  %v1156_v55 = vadd.f32 %v1155_v36, %v1035_v30 }
 0x13d   :  { %v1223_v15 = vadd.f32 %v1222_v24, %v1156_v55 }
 0x13f   :  { %v1278_v39 = vadd.f32 %v1277_v61, %v1223_v15 }
 0x142   :  { %v1227_v54 = vpop.f32.mrf.mxu2 }
 0x143   :  { %v1050_v18 = vpop.f32.mrf.mxu0 }
 0x144   :  { %v1159_v42 = vpop.f32.mrf.mxu1  ;;  %v1051_v9 = vadd.f32 %v1050_v18, %v116_v47 }
 0x145   :  { %v1283_v62 = vpop.f32.mrf.mxu3  ;;  %v1160_v25 = vadd.f32 %v1159_v42, %v1043_v52 }
 0x147   :  { %v1228_v51 = vadd.f32 %v1227_v54, %v1160_v25 }
 0x149   :  { %v1284_v6 = vadd.f32 %v1283_v62, %v1228_v51 }
 0x14c   :  { %v1232_v3 = vpop.f32.mrf.mxu2 }
 0x14e   :  { %v1163_v7 = vpop.f32.mrf.mxu1  ;;  %v1358_v59 = vpop.f32.mrf.mxu0 }
 0x14f   :  { %v1289_v29 = vpop.f32.mrf.mxu3  ;;  %v1164_v23 = vadd.f32 %v1163_v7, %v1051_v9  ;;  %v1359_v43 = vadd.f32 %v1358_v59, %v1272_v5 }
 0x151   :  { %v1233_v45 = vadd.f32 %v1232_v3, %v1164_v23 }
 0x153   :  { %v1290_v16 = vadd.f32 %v1289_v29, %v1233_v45 }
 0x156   :  { %v1366_v58 = vpop.f32.mrf.mxu2  ;;  %v1407_v22 = vpop.f32.mrf.mxu1 }
 0x157   :  { %v1367_v60 = vadd.f32 %v1366_v58, %v1284_v6  ;;  %v1408_v14 = vadd.f32 %v1407_v22, %v1359_v43  ;;  %v1362_v21 = vpop.f32.mrf.mxu0 }
 0x158   :  { %v1415_v53 = vpop.f32.mrf.mxu3  ;;  %v1363_v20 = vadd.f32 %v1362_v21, %v1278_v39 }
 0x159   :  { %v1416_v49 = vadd.f32 %v1415_v53, %v1367_v60  ;;  %1424 = vst [vmem:[#allocation8 + $0x10] sm:$0xff] %v1408_v14 }
 0x15b   :  { %1430 = vst [vmem:[#allocation8 + $0x40] sm:$0xff] %v1416_v49 }
 0x15e   :  { %v1370_v31 = vpop.f32.mrf.mxu2  ;;  %v1411_v10 = vpop.f32.mrf.mxu1 }
 0x15f   :  { %v1371_v40 = vadd.f32 %v1370_v31, %v1290_v16  ;;  %v1412_v13 = vadd.f32 %v1411_v10, %v1363_v20 }
 0x160   :  { %v1419_v56 = vpop.f32.mrf.mxu3 }
 0x161   :  { %v1420_v34 = vadd.f32 %v1419_v56, %v1371_v40  ;;  %1427 = vst [vmem:[#allocation8 + $0x28] sm:$0xff] %v1412_v13 }
 0x163   :  { %1433 = vst [vmem:[#allocation8 + $0x58] sm:$0xff] %v1420_v34 }
 0x164   :  { %1446 = dma.vmem_to_hbm [thread:$0]  %s1439_s29, 1536, %s1441_s5, [#allocation4], %s1597_s20, %s1597_s20, %s1598_s21  }
 0x165   :  { %1594 = dma.done.wait [#allocation4], 1536  }
 0x166   :  { %1595 = vsyncadd [#allocation4], 4294965760 }
 0x167   :  { %1451 = vsyncpa [#allocation3], 1 }
 0x168   :  { %1452 = vsyncpa [#allocation6], 1 }
 0x169   :  { %1453 = vsyncpa [#allocation4], 1 }

</bundles_post_ra>
